<compile_context>
chip_gen: v7x
topology: tpu7x:2x2x1
jax: 0.10.0
libtpu: 0.0.40
codegen_flags: <defaults>
</compile_context>

<pallas_src>
import functools

import jax
import jax.numpy as jnp
from jax.experimental import pallas as pl
from jax.experimental.pallas import tpu as pltpu


# ---------------------------------------------------------------------------
# Kernel
# ---------------------------------------------------------------------------

def agn_kernel(x_ref, g_ref, b_ref, o_ref, *, hw, cpg, eps):
    """Fused GroupNorm + per-channel modulation for one (sample, group-tile).

    x_ref : (1, Gt, L)    L = cpg * H * W; one row per (sample, group)
    g_ref : (1, Gt, cpg)  per-channel scale (conditional gamma, affine folded)
    b_ref : (1, Gt, cpg)  per-channel shift (conditional beta, affine folded)
    o_ref : (1, Gt, L)
    """
    L = x_ref.shape[2]

    # Group statistics: each row is one group's full element set -> pure lane
    # reductions, single pass over x (sum and sum-of-squares).
    xf = x_ref[0].astype(jnp.float32)                      # (Gt, L)
    inv_n = 1.0 / L
    mean = jnp.sum(xf, axis=1, keepdims=True) * inv_n      # (Gt, 1)
    ex2 = jnp.sum(xf * xf, axis=1, keepdims=True) * inv_n  # (Gt, 1)
    var = jnp.maximum(ex2 - mean * mean, 0.0)              # biased, guarded
    rstd = jax.lax.rsqrt(var + eps)                        # (Gt, 1)

    # Fold mean / rstd into the per-channel affine: one scale+shift per channel.
    g = g_ref[0].astype(jnp.float32)                       # (Gt, cpg)
    b = b_ref[0].astype(jnp.float32)                       # (Gt, cpg)
    scale = g * rstd                                       # (Gt, cpg)
    shift = b - mean * scale                               # (Gt, cpg)

    # Apply: one FMA per element on static channel chunks.  When hw % 128 == 0
    # (true for square maps >= 16x16 and most conv feature maps) these slices
    # are lane-aligned -> unmasked vld/vst.
    for k in range(cpg):                                   # static, small
        lo = k * hw
        sk = scale[:, k:k + 1]                             # (Gt, 1)
        bk = shift[:, k:k + 1]                             # (Gt, 1)
        xk = x_ref[0, :, lo:lo + hw].astype(jnp.float32)   # (Gt, hw)
        o_ref[0, :, lo:lo + hw] = (xk * sk + bk).astype(o_ref.dtype)


# ---------------------------------------------------------------------------
# Wrapper
# ---------------------------------------------------------------------------

def _pick_group_tile(G, L, itemsize, n_batch, *, target_bytes=4 << 20,
                     min_steps=8):
    """Pick the group-tile Gt: a sublane-packed divisor of G whose (Gt, L)
    block stays within ~target_bytes, preferring enough total grid steps that
    the auto-pipeline (and both v7x TensorCores) have work to overlap."""
    step = {1: 32, 2: 16}.get(itemsize, 8)
    cands = sorted(g for g in range(step, G + 1, step) if G % g == 0)
    if not cands:
        return G                            # full-dim block is always legal
    fitting = [g for g in cands if g * L * itemsize <= target_bytes]
    if not fitting:
        # TODO(synk): for very large H*W even the smallest tile exceeds the
        # VMEM budget; an inner L-split pipeline (emit_pipeline with sum/sumsq
        # accumulators + a second apply pass) would be needed here.
        return cands[0]
    for g in reversed(fitting):             # largest fitting tile ...
        if n_batch * (G // g) >= min_steps:
            return g                        # ... that still leaves enough steps
    return fitting[0]                       # small problem: maximise steps


def adaptive_group_norm(x, c, wg, bg, wb, bb, *, num_groups=32, eps=1e-5,
                        weight=None, bias=None):
    """AdaptiveGroupNorm forward (PyTorch semantics), NCHW kept end-to-end.

    x : (N, C, H, W);  c : (N, D)
    wg/wb : (D, C) so that fc(c) = c @ w + b;  bg/bb : (C,)
    weight/bias : optional (C,) learned affine (the module's affine=True path).
    """
    N, C, H, W = x.shape
    G = num_groups
    assert C % G == 0, "num_channels must be divisible by num_groups"
    cpg = C // G
    hw = H * W
    L = cpg * hw

    # fc_gamma / fc_beta hoisted out of the kernel: tiny (N,D)x(D,C) matmuls.
    cf = c.astype(jnp.float32)
    gamma = 1.0 + cf @ wg + bg                              # (N, C)
    beta = cf @ wb + bb                                     # (N, C)
    if weight is not None:
        # PyTorch affine=True: F.group_norm applies (w, b) per channel AND the
        # modulation gets gamma+=w, beta+=b.  Fold everything per channel:
        #   (gamma+w) * (w*xn + b) + (beta+b) = xn*((gamma+w)*w)
        #                                       + ((gamma+w)*b + beta + b)
        ga = gamma + weight[None, :]
        ba = beta + bias[None, :]
        scale_c = ga * weight[None, :]
        shift_c = ga * bias[None, :] + ba
    else:
        scale_c = gamma
        shift_c = beta

    # Free contiguous reshapes -- NCHW kept, no transposes, no extra HBM passes.
    x_r = x.reshape(N, G, L)
    scale_r = scale_c.reshape(N, G, cpg).astype(jnp.float32)
    shift_r = shift_c.reshape(N, G, cpg).astype(jnp.float32)

    Gt = _pick_group_tile(G, L, jnp.dtype(x.dtype).itemsize, N)
    grid = (N, G // Gt)

    kernel = functools.partial(agn_kernel, hw=hw, cpg=cpg, eps=eps)
    out = pl.pallas_call(
        kernel,
        out_shape=jax.ShapeDtypeStruct((N, G, L), x.dtype),
        grid=grid,
        in_specs=[
            pl.BlockSpec((1, Gt, L), lambda n, t: (n, t, 0)),
            pl.BlockSpec((1, Gt, cpg), lambda n, t: (n, t, 0)),
            pl.BlockSpec((1, Gt, cpg), lambda n, t: (n, t, 0)),
        ],
        out_specs=pl.BlockSpec((1, Gt, L), lambda n, t: (n, t, 0)),
        compiler_params=pltpu.CompilerParams(
            dimension_semantics=("parallel", "parallel"),
            vmem_limit_bytes=32 << 20),
    )(x_r, scale_r, shift_r)

    return out.reshape(N, C, H, W)


# ---------------------------------------------------------------------------
# Pure-JAX reference for validation
# ---------------------------------------------------------------------------

def reference_forward(x, c, wg, bg, wb, bb, *, num_groups=32, eps=1e-5,
                      weight=None, bias=None):
    N, C, H, W = x.shape
    xg = x.reshape(N, num_groups, -1)
    mean = xg.mean(axis=2, keepdims=True)
    var = ((xg - mean) ** 2).mean(axis=2, keepdims=True)
    xn = ((xg - mean) / jnp.sqrt(var + eps)).reshape(N, C, H, W)
    if weight is not None:
        xn = xn * weight[None, :, None, None] + bias[None, :, None, None]
    gamma = 1.0 + c @ wg + bg                               # (N, C)
    beta = c @ wb + bb                                      # (N, C)
    if weight is not None:
        gamma = gamma + weight[None, :]
        beta = beta + bias[None, :]
    return gamma[:, :, None, None] * xn + beta[:, :, None, None]


# ---------------------------------------------------------------------------
# Main
# ---------------------------------------------------------------------------

if __name__ == "__main__":
    # num_groups defaults to 32 in AdaptiveGroupNorm, so C must be a multiple
    # of 32 (as in the PyTorch module).
    N, C, H, W = 2, 64, 16, 16
    D = 16                      # cond_dim
    num_groups = 32
    eps = 1e-5

    key = jax.random.PRNGKey(0)
    kx, kc, k1, k2, k3, k4, k5, k6 = jax.random.split(key, 8)
    x = jax.random.normal(kx, (N, C, H, W), jnp.float32)    # NCHW like PyTorch
    c = jax.random.normal(kc, (N, D), jnp.float32)
    wg = jax.random.normal(k1, (D, C), jnp.float32) * 0.05
    bg = jax.random.normal(k2, (C,), jnp.float32) * 0.05
    wb = jax.random.normal(k3, (D, C), jnp.float32) * 0.05
    bb = jax.random.normal(k4, (C,), jnp.float32) * 0.05

    fwd = jax.jit(functools.partial(adaptive_group_norm,
                                    num_groups=num_groups, eps=eps))

    # Default module configuration: affine=False.
    out = jax.block_until_ready(fwd(x, c, wg, bg, wb, bb))
    ref = reference_forward(x, c, wg, bg, wb, bb, num_groups=num_groups, eps=eps)
    assert out.shape == (N, C, H, W)
    max_err = float(jnp.max(jnp.abs(out - ref)))
    assert jnp.allclose(out, ref, atol=1e-4, rtol=1e-4), max_err

    # affine=True path (same kernel; learned per-channel affine folded in the
    # wrapper, matching the PyTorch module's semantics).
    w_aff = jax.random.uniform(k5, (C,), jnp.float32)
    b_aff = jax.random.normal(k6, (C,), jnp.float32) * 0.1
    out_a = jax.block_until_ready(
        fwd(x, c, wg, bg, wb, bb, weight=w_aff, bias=b_aff))
    ref_a = reference_forward(x, c, wg, bg, wb, bb, num_groups=num_groups,
                              eps=eps, weight=w_aff, bias=b_aff)
    max_err_a = float(jnp.max(jnp.abs(out_a - ref_a)))
    assert jnp.allclose(out_a, ref_a, atol=1e-4, rtol=1e-4), max_err_a

    print("KERNEL_OK")
</pallas_src>

<mosaic_0001>
module attributes {stable_mosaic.version = 11 : i64} {
  func.func @agn_kernel(%arg0: i32, %arg1: i32, %arg2: memref<1x8x512xf32, #tpu.memory_space<vmem>>, %arg3: memref<1x8x2xf32, #tpu.memory_space<vmem>>, %arg4: memref<1x8x2xf32, #tpu.memory_space<vmem>>, %arg5: memref<1x8x512xf32, #tpu.memory_space<vmem>>) attributes {dimension_semantics = [#tpu.dimension_semantics<parallel>, #tpu.dimension_semantics<parallel>], iteration_bounds = array<i64: 2, 4>, scalar_prefetch = 0 : i64, scratch_operands = 0 : i64, tpu.core_type = #tpu.core_type<tc>, window_params = [{transform_indices = @transform_0, window_bounds = array<i64: 1, 8, 512>}, {transform_indices = @transform_1, window_bounds = array<i64: 1, 8, 2>}, {transform_indices = @transform_2, window_bounds = array<i64: 1, 8, 2>}, {transform_indices = @transform_3, window_bounds = array<i64: 1, 8, 512>}]} {
    %c0 = arith.constant 0 : index
    %c0_0 = arith.constant 0 : index
    %c0_1 = arith.constant 0 : index
    %0 = vector.load %arg2[%c0, %c0_0, %c0_1] : memref<1x8x512xf32, #tpu.memory_space<vmem>>, vector<1x8x512xf32>
    %1 = vector.shape_cast %0 : vector<1x8x512xf32> to vector<8x512xf32>
    %cst = arith.constant dense<0.000000e+00> : vector<8xf32>
    %2 = vector.multi_reduction <add>, %1, %cst [1] : vector<8x512xf32> to vector<8xf32>
    %3 = vector.shape_cast %2 : vector<8xf32> to vector<8x1xf32>
    %cst_2 = arith.constant 0.001953125 : f32
    %4 = vector.broadcast %cst_2 : f32 to vector<8x1xf32>
    %5 = arith.mulf %3, %4 : vector<8x1xf32>
    %6 = arith.mulf %1, %1 : vector<8x512xf32>
    %cst_3 = arith.constant dense<0.000000e+00> : vector<8xf32>
    %7 = vector.multi_reduction <add>, %6, %cst_3 [1] : vector<8x512xf32> to vector<8xf32>
    %8 = vector.shape_cast %7 : vector<8xf32> to vector<8x1xf32>
    %cst_4 = arith.constant 0.001953125 : f32
    %9 = vector.broadcast %cst_4 : f32 to vector<8x1xf32>
    %10 = arith.mulf %8, %9 : vector<8x1xf32>
    %11 = arith.mulf %5, %5 : vector<8x1xf32>
    %12 = arith.subf %10, %11 : vector<8x1xf32>
    %cst_5 = arith.constant 0.000000e+00 : f32
    %13 = vector.broadcast %cst_5 : f32 to vector<8x1xf32>
    %14 = arith.maximumf %12, %13 : vector<8x1xf32>
    %cst_6 = arith.constant 9.99999974E-6 : f32
    %15 = vector.broadcast %cst_6 : f32 to vector<8x1xf32>
    %16 = arith.addf %14, %15 : vector<8x1xf32>
    %17 = math.rsqrt %16 : vector<8x1xf32>
    %c0_7 = arith.constant 0 : index
    %c0_8 = arith.constant 0 : index
    %c0_9 = arith.constant 0 : index
    %18 = vector.load %arg3[%c0_7, %c0_8, %c0_9] : memref<1x8x2xf32, #tpu.memory_space<vmem>>, vector<1x8x2xf32>
    %19 = vector.shape_cast %18 : vector<1x8x2xf32> to vector<8x2xf32>
    %c0_10 = arith.constant 0 : index
    %c0_11 = arith.constant 0 : index
    %c0_12 = arith.constant 0 : index
    %20 = vector.load %arg4[%c0_10, %c0_11, %c0_12] : memref<1x8x2xf32, #tpu.memory_space<vmem>>, vector<1x8x2xf32>
    %21 = vector.shape_cast %20 : vector<1x8x2xf32> to vector<8x2xf32>
    %22 = vector.broadcast %17 : vector<8x1xf32> to vector<8x2xf32>
    %23 = arith.mulf %19, %22 : vector<8x2xf32>
    %24 = vector.broadcast %5 : vector<8x1xf32> to vector<8x2xf32>
    %25 = arith.mulf %24, %23 : vector<8x2xf32>
    %26 = arith.subf %21, %25 : vector<8x2xf32>
    %27 = vector.extract_strided_slice %23 {offsets = [0, 0], sizes = [8, 1], strides = [1, 1]} : vector<8x2xf32> to vector<8x1xf32>
    %28 = vector.extract_strided_slice %26 {offsets = [0, 0], sizes = [8, 1], strides = [1, 1]} : vector<8x2xf32> to vector<8x1xf32>
    %c0_13 = arith.constant 0 : index
    %c0_14 = arith.constant 0 : index
    %c0_15 = arith.constant 0 : index
    %29 = vector.load %arg2[%c0_13, %c0_14, %c0_15] : memref<1x8x512xf32, #tpu.memory_space<vmem>>, vector<1x8x256xf32>
    %30 = vector.shape_cast %29 : vector<1x8x256xf32> to vector<8x256xf32>
    %31 = vector.broadcast %27 : vector<8x1xf32> to vector<8x256xf32>
    %32 = arith.mulf %30, %31 : vector<8x256xf32>
    %33 = vector.broadcast %28 : vector<8x1xf32> to vector<8x256xf32>
    %34 = arith.addf %32, %33 : vector<8x256xf32>
    %c0_16 = arith.constant 0 : index
    %c0_17 = arith.constant 0 : index
    %c0_18 = arith.constant 0 : index
    %35 = vector.load %arg5[%c0_16, %c0_17, %c0_18] : memref<1x8x512xf32, #tpu.memory_space<vmem>>, vector<1x8x256xf32>
    %36 = vector.shape_cast %35 : vector<1x8x256xf32> to vector<8x256xf32>
    %37 = vector.shape_cast %34 : vector<8x256xf32> to vector<1x8x256xf32>
    tpu.vector_store %arg5[%c0_16, %c0_17, %c0_18], %37 {strides = array<i32>} : memref<1x8x512xf32, #tpu.memory_space<vmem>>, vector<1x8x256xf32>,
    %38 = vector.extract_strided_slice %23 {offsets = [0, 1], sizes = [8, 1], strides = [1, 1]} : vector<8x2xf32> to vector<8x1xf32>
    %39 = vector.extract_strided_slice %26 {offsets = [0, 1], sizes = [8, 1], strides = [1, 1]} : vector<8x2xf32> to vector<8x1xf32>
    %c0_19 = arith.constant 0 : index
    %c0_20 = arith.constant 0 : index
    %c256 = arith.constant 256 : index
    %40 = vector.load %arg2[%c0_19, %c0_20, %c256] : memref<1x8x512xf32, #tpu.memory_space<vmem>>, vector<1x8x256xf32>
    %41 = vector.shape_cast %40 : vector<1x8x256xf32> to vector<8x256xf32>
    %42 = vector.broadcast %38 : vector<8x1xf32> to vector<8x256xf32>
    %43 = arith.mulf %41, %42 : vector<8x256xf32>
    %44 = vector.broadcast %39 : vector<8x1xf32> to vector<8x256xf32>
    %45 = arith.addf %43, %44 : vector<8x256xf32>
    %c0_21 = arith.constant 0 : index
    %c0_22 = arith.constant 0 : index
    %c256_23 = arith.constant 256 : index
    %46 = vector.load %arg5[%c0_21, %c0_22, %c256_23] : memref<1x8x512xf32, #tpu.memory_space<vmem>>, vector<1x8x256xf32>
    %47 = vector.shape_cast %46 : vector<1x8x256xf32> to vector<8x256xf32>
    %48 = vector.shape_cast %45 : vector<8x256xf32> to vector<1x8x256xf32>
    tpu.vector_store %arg5[%c0_21, %c0_22, %c256_23], %48 {strides = array<i32>} : memref<1x8x512xf32, #tpu.memory_space<vmem>>, vector<1x8x256xf32>,
    return
  }
  func.func @transform_0(%arg0: i32, %arg1: i32) -> (i32, i32, i32) {
    %c0_i32 = arith.constant 0 : i32
    %c0_i32_0 = arith.constant 0 : i32
    return %arg0, %arg1, %c0_i32 : i32, i32, i32
  }
  func.func @transform_1(%arg0: i32, %arg1: i32) -> (i32, i32, i32) {
    %c0_i32 = arith.constant 0 : i32
    %c0_i32_0 = arith.constant 0 : i32
    return %arg0, %arg1, %c0_i32 : i32, i32, i32
  }
  func.func @transform_2(%arg0: i32, %arg1: i32) -> (i32, i32, i32) {
    %c0_i32 = arith.constant 0 : i32
    %c0_i32_0 = arith.constant 0 : i32
    return %arg0, %arg1, %c0_i32 : i32, i32, i32
  }
  func.func @transform_3(%arg0: i32, %arg1: i32) -> (i32, i32, i32) {
    %c0_i32 = arith.constant 0 : i32
    %c0_i32_0 = arith.constant 0 : i32
    return %arg0, %arg1, %c0_i32 : i32, i32, i32
  }
}

</mosaic_0001>

<bundles_post_ra>
// kernel: adaptive_group_norm.1
= control target key start
LH: loop header
LB: loop body
LE: loop exit
PB: predicated region body
PF: predicated region fallthrough
CT: control target
= control target key end

     0   :  { %s591_s12 = smov 0   ;;  %s593_s13 = smov 0   ;;  %s655_s0 = inlined_call_operand.vmem [shape: f32[2,32,512], index: 0, kind: input, shape index: {}]   ;;  %s656_s1 = inlined_call_operand.vmem [shape: f32[2,32,2], index: 1, kind: input, shape index: {}]   ;;  %s657_s2 = inlined_call_operand.vmem [shape: f32[2,32,2], index: 2, kind: input, shape index: {}]   ;;  %s658_s3 = inlined_call_operand.vmem [shape: f32[2,32,512], index: 3, kind: output, shape index: {}]  }
   0x1   :  { %s595_s14 = smov 0   ;;  %s597_s15 = smov 0  }
   0x2   :  { %s599_s16 = smov 0  }
   0x3 LB: > { %s22_s17 = sadd.s32 1, %s559_s14  ;;  %s25_s18 = sadd.s32 1, %s563_s15  ;;  %s567_s16 = sphi %s599_s16, %s13_s16   ;;  %s563_s15 = sphi %s597_s15, %s662_s15   ;;  %s559_s14 = sphi %s595_s14, %s661_s14   ;;  %s555_s13 = sphi %s593_s13, %s660_s13   ;;  %s551_s12 = sphi %s591_s12, %s659_s12  }
   0x4   : > { %p23_p0 = scmp.ge.s32.totalorder %s22_s17, 4  ;;  %p468_p1 = scmp.ge.s32.totalorder %s567_s16, 1 }
   0x5   : > { %p187_p2 = scmp.lt.s32.totalorder %s567_s16, 9 }
   0x6   : > { %s664_s17 = smov (%p23_p0, %s22_s17), 0  ;;  %s666_s18 = smov (!%p23_p0, %s25_s18), %s563_s15 }
   0x7   : > { %p188_p3 = pnand %p468_p1, %p187_p2  ;;  %p27_p4 = scmp.ge.s32.totalorder %s666_s18, 2 }
   0x8   : > { %p235_p5 = scmp.lt.s32.totalorder (!%p188_p3), %s555_s13, 1  ;;  %p237_p6 = scmp.lt.s32.totalorder (!%p188_p3), %s551_s12, 3  ;;  %v569_v14 = vmov (!%p188_p3), 0   ;;  %v570_v29 = vmov (!%p188_p3), 1  }
   0x9   : > { %s668_s18 = smov (%p27_p4, %s666_s18), 0  ;;  %191 = sbr.rel (%p188_p3) target bundleno = 335 (0x14f), region = 32 }
   0xa   : > { %523 = vset.pattern.permute.xlu1 (!%p188_p3), %v569_v14  ;;  %525 = vset.pattern.permute.xlu0 (!%p188_p3), %v569_v14 }
  0x10   : > { %s670_s13 = smov (!%p235_p5, %s555_s13), 1  ;;  %s672_s12 = smov (!%p237_p6, %s551_s12), 3 }
  0x11   : > { %s470_s19 = sshll.u32 %s670_s13, 4  ;;  %s469_s20 = sshll.u32 %s672_s12, 2 }
  0x12   : > { %s621_s21 = sadd.s32 %s470_s19, %s469_s20  ;;  %s472_s26 = sshll.u32 %s670_s13, 2 }
  0x13   : > { %s471_s22 = sshll.u32 %s621_s21, 3  ;;  %s249_s27 = sadd.s32 %s472_s26, %s672_s12 }
  0x14   : > { %s243_s25 = scalar_lea.vmem %s655_s0, %s471_s22  ;;  %s473_s28 = sshll.u32 %s249_s27, 3 }
  0x15   : > { %v269_v0 = vld [vmem:[%s243_s25] sm:$0xff]  ;;  %v270_v1 = vld [vmem:[%s243_s25 + $0x8] sm:$0xff]  ;;  %v271_v2 = vld [vmem:[%s243_s25 + $0x10] sm:$0xff]  ;;  %s251_s4 = scalar_lea.vmem %s656_s1, %s473_s28  ;;  %s259_s7 = scalar_lea.vmem %s657_s2, %s473_s28 }
  0x16   : > { %v273_v3 = vadd.f32 %v270_v1, %v269_v0  ;;  %v279_v4 = vmul.f32 %v269_v0, %v269_v0  ;;  %v280_v5 = vmul.f32 %v270_v1, %v270_v1  ;;  %v281_v6 = vmul.f32 %v271_v2, %v271_v2  ;;  %v272_v7 = vld [vmem:[%s243_s25 + $0x18] sm:$0xff]  ;;  %v294_v23 = vld [vmem:[%s251_s4] sm:$0xff]  ;;  %s268_s10 = scalar_lea.vmem %s658_s3, %s471_s22 }
  0x17   : > { %v282_v9 = vmul.f32 %v272_v7, %v272_v7  ;;  %v295_v26 = vld [vmem:[%s259_s7] sm:$0xff] }
  0x18   : > { %v274_v8 = vadd.f32 %v273_v3, %v271_v2  ;;  %v283_v10 = vadd.f32 %v280_v5, %v279_v4 }
  0x1a   : > { %v275_v11 = vadd.f32 %v274_v8, %v272_v7  ;;  %v284_v12 = vadd.f32 %v283_v10, %v281_v6 }
  0x1c   : > { %276 = vadd.xlane.f32.xlu0 %v275_v11  ;;  %v285_v13 = vadd.f32 %v284_v12, %v282_v9 }
  0x20   : > { %286 = vadd.xlane.f32.xlu0 %v285_v13 }
  0xa9   : > { %v277_v15 = vpop.xlane.xlu0 %276 }
  0xaa   : > { %v278_v16 = vmul.f32 0.001953125, %v277_v15 }
  0xac   : > { %v289_v18 = vmul.f32 %v278_v16, %v278_v16 }
  0xad   : > { %v287_v17 = vpop.xlane.xlu0 %286 }
  0xae   : > { %v288_v19 = vmul.f32 0.001953125, %v287_v17 }
  0xb0   : > { %v290_v20 = vsub.f32 %v288_v19, %v289_v18 }
  0xb2   : > { %v291_v21 = vmax.f32 %v290_v20, 0.0 }
  0xb4   : > { %v292_v22 = vadd.f32 1e-05, %v291_v21 }
  0xb6   : > { %527 = vrsqrt.f32 %v292_v22 }
  0xc0   : > { %v528_v24 = vpop.eup %527 }
  0xc1   : > { %v296_v25 = vmul.f32 %v528_v24, %v294_v23 }
  0xc3   : > { %303 = vperm.xlu1 %523, %v296_v25   ;;  %v297_v27 = vmul.f32 %v296_v25, %v278_v16 }
  0xc5   : > { %v298_v28 = vsub.f32 %v295_v26, %v297_v27 }
  0xc7   : > { %524 = vset.pattern.permute.xlu1 %v570_v29  ;;  %310 = vperm.xlu0 %525, %v298_v28  }
  0xc8   : > { %320 = vperm.xlu1 %524, %v296_v25  }
  0xcb   : > { %526 = vset.pattern.permute.xlu0 %v570_v29 }
  0xcc   : > { %326 = vperm.xlu1 %524, %v298_v28  }
 0x142   : > { %v304_v30 = vpop.permute.xlu1 %303 }
 0x143   : > { %v306_v31 = vmul.f32 %v304_v30, %v269_v0  ;;  %v307_v32 = vmul.f32 %v304_v30, %v270_v1 }
 0x146   : > { %v311_v33 = vpop.permute.xlu0 %310 }
 0x147   : > { %v313_v34 = vadd.f32 %v311_v33, %v306_v31  ;;  %v314_v35 = vadd.f32 %v311_v33, %v307_v32  ;;  %v321_v36 = vpop.permute.xlu1 %320 }
 0x148   : > { %v323_v37 = vmul.f32 %v321_v36, %v271_v2  ;;  %v324_v38 = vmul.f32 %v321_v36, %v272_v7 }
 0x149   : > { %315 = vst [vmem:[%s268_s10] sm:$0xff] %v313_v34  ;;  %316 = vst [vmem:[%s268_s10 + $0x8] sm:$0xff] %v314_v35 }
 0x14b   : > { %v327_v39 = vpop.permute.xlu1 %326 }
 0x14c   : > { %v329_v40 = vadd.f32 %v327_v39, %v323_v37  ;;  %v330_v41 = vadd.f32 %v327_v39, %v324_v38 }
 0x14e   : > { %331 = vst [vmem:[%s268_s10 + $0x10] sm:$0xff] %v329_v40  ;;  %332 = vst [vmem:[%s268_s10 + $0x18] sm:$0xff] %v330_v41 }
 0x14f PF: > { %s13_s16 = sadd.s32 1, %s567_s16   ;;  %s659_s12 = smov %s559_s14 }
 0x150   : > { %p10_p7 = scmp.ge.s32.totalorder %s13_s16, 10   ;;  %s660_s13 = smov %s563_s15 }
 0x151   : > { %s661_s14 = smov %s664_s17  ;;  %s662_s15 = smov %s668_s18 }
 0x152   :  { %12 = sbr.rel (!%p10_p7) target bundleno = 3 (0x3), region = 68 }

</bundles_post_ra>
